<compile_context>
chip_gen: v6e
topology: v6e:2x2x1
jax: 0.10.0
libtpu: 0.0.40
codegen_flags: <defaults>
</compile_context>

<pallas_src>
import functools

import jax
import jax.numpy as jnp
from jax.experimental import pallas as pl
from jax.experimental.pallas import tpu as pltpu


def _so3_gate_kernel(x_ref, o_ref, *, S: int, F: int):
    # x_ref / o_ref: (bn, S*F) lane-dense VMEM tiles.  Row-major (S, F) flatten
    # puts the l=0, m=0 component in the first F lanes of each row.
    x = x_ref[...]
    gate = jax.nn.sigmoid(x[:, :F].astype(jnp.float32))  # EUP, f32 accuracy
    gate = gate.astype(x.dtype)                          # narrow BEFORE tiling
    gate = jnp.tile(gate, (1, S))                        # XLU broadcast over S
    o_ref[...] = (x * gate).astype(o_ref.dtype)


def _vmem_capacity_bytes() -> int:
    """Per-core physical VMEM (128 MiB v5e/v6e, 64 MiB v7x); safe fallback."""
    try:
        cap = getattr(pltpu.get_tpu_info(), "vmem_capacity_bytes", None)
        if cap:
            return int(cap)
    except Exception:
        pass
    return 64 << 20  # conservative (v7x per-TensorCore)


def so3_gated_nonlinearity(
    x: jax.Array,
    *,
    bn: int | None = None,
    target_tile_bytes: int | None = None,
) -> jax.Array:
    """Pallas implementation of SO3GatedNonlinearity.forward.

    Args:
      x: array of shape [N, S, F] with S = (lmax + 1)**2.
      bn: optional batch-tile size.  N need NOT be divisible by bn (the last
        grid block is ragged; no padding copies are made).
      target_tile_bytes: optional per-buffer tile-size target; defaults are
        generation-aware.
    """
    N, S, F = x.shape
    SF = S * F
    itemsize = jnp.dtype(x.dtype).itemsize
    # Sublane pack: 8 rows for f32, 16 for bf16, 32 for int8/fp8.
    pack = max(8, 32 // itemsize)
    row_bytes = SF * itemsize

    cap = _vmem_capacity_bytes()
    if target_tile_bytes is None:
        # v7x (64 MiB VMEM/TC, ~3.2 TB/s HBM) wants bigger tiles to amortize
        # the ~0.35 us grid-step overhead; v5e/v6e are fine at ~2 MiB.
        target_tile_bytes = (6 << 20) if cap <= (64 << 20) else (2 << 20)

    if bn is None:
        bn = max(pack, int(target_tile_bytes // max(row_bytes, 1)))
        # Keep >= ~8 grid steps for mid/large N so double-buffering actually
        # overlaps DMA with compute (and both v7x cores get work).
        min_steps = 8
        if N >= min_steps * pack:
            bn = min(bn, max(pack, (N // min_steps // pack) * pack))

    if bn >= N:
        bn = N                                  # single block == full extent
    else:
        bn = max(pack, (bn // pack) * pack)     # dtype-aware sublane rounding

    # Ragged grid: no padding / slicing copies.  OOB rows of the last block
    # are garbage-in/garbage-out for this elementwise op; writes are discarded.
    grid = (pl.cdiv(N, bn),)
    spec = pl.BlockSpec((bn, SF), lambda i: (i, 0))

    # Scoped-VMEM estimate: double-buffered in + out tiles with (pack, 128)
    # layout padding, plus slack.  Raise the limit only when needed, and never
    # past ~75% of this generation's physical VMEM.
    lane_pad = pl.cdiv(SF, 128) * 128
    sub_pad = pl.cdiv(bn, pack) * pack
    tile_bytes = sub_pad * lane_pad * itemsize
    vmem_needed = 4 * tile_bytes + (2 << 20)
    vmem_ceiling = (cap * 3) // 4
    vmem_limit = int(min(vmem_needed, vmem_ceiling)) if vmem_needed > (16 << 20) else None

    xf = x.reshape(N, SF)  # contiguous row-major flatten: metadata only
    yf = pl.pallas_call(
        functools.partial(_so3_gate_kernel, S=S, F=F),
        out_shape=jax.ShapeDtypeStruct((N, SF), x.dtype),
        grid_spec=pl.GridSpec(grid=grid, in_specs=[spec], out_specs=spec),
        input_output_aliases={0: 0},
        compiler_params=pltpu.CompilerParams(
            # TODO(synk): on v7x verify the batch axis shards across both
            # TensorCores; if not, switch to pltpu.CORE_PARALLEL here.
            dimension_semantics=("parallel",),
            vmem_limit_bytes=vmem_limit,
        ),
    )(xf)

    return yf.reshape(N, S, F)


def so3_gated_nonlinearity_ref(x: jax.Array) -> jax.Array:
    """Pure-JAX reference mirroring the PyTorch forward."""
    s0 = x[:, 0, :]
    return x * jax.nn.sigmoid(s0)[:, None, :]


if __name__ == "__main__":
    # Shapes consistent with the module: lmax=2 -> S=(lmax+1)^2=9, F=32 feats.
    lmax = 2
    S, F = (lmax + 1) ** 2, 32
    k0, k1, k2 = jax.random.split(jax.random.PRNGKey(0), 3)

    # Case 1: small batch, default tile selection -> single full-extent block.
    x1 = jax.random.normal(k0, (8, S, F), dtype=jnp.float32)
    want1 = so3_gated_nonlinearity_ref(x1)            # computed before the call
    y1 = jax.block_until_ready(so3_gated_nonlinearity(x1))
    assert y1.shape == (8, S, F)
    assert jnp.allclose(y1, want1, atol=1e-6, rtol=1e-6), "mismatch (case 1)"

    # Case 2: N not divisible by bn -> ragged multi-step grid, no padding.
    x2 = jax.random.normal(k1, (13, S, F), dtype=jnp.float32)
    want2 = so3_gated_nonlinearity_ref(x2)
    y2 = jax.block_until_ready(so3_gated_nonlinearity(x2, bn=8))
    assert y2.shape == (13, S, F)
    assert jnp.allclose(y2, want2, atol=1e-6, rtol=1e-6), "mismatch (case 2)"

    # Case 3: bf16 input -> dtype-aware sublane pack (16) and narrow-dtype gate.
    x3 = jax.random.normal(k2, (20, S, F), dtype=jnp.float32).astype(jnp.bfloat16)
    want3 = so3_gated_nonlinearity_ref(x3).astype(jnp.float32)
    y3 = jax.block_until_ready(so3_gated_nonlinearity(x3, bn=16))
    assert y3.shape == (20, S, F)
    assert jnp.allclose(y3.astype(jnp.float32), want3, atol=5e-2, rtol=5e-2), \
        "mismatch (case 3)"

    print("KERNEL_OK")
</pallas_src>

<mosaic_0001>
module attributes {stable_mosaic.version = 11 : i64} {
  func.func @_so3_gate_kernel(%arg0: i32, %arg1: memref<8x288xf32, #tpu.memory_space<vmem>>, %arg2: memref<8x288xf32, #tpu.memory_space<vmem>>) attributes {dimension_semantics = [#tpu.dimension_semantics<parallel>], iteration_bounds = array<i64: 1>, scalar_prefetch = 0 : i64, scratch_operands = 0 : i64, tpu.core_type = #tpu.core_type<tc>, window_params = [{transform_indices = @transform_0, window_bounds = array<i64: 8, 288>}, {transform_indices = @transform_1, window_bounds = array<i64: 8, 288>}]} {
    %c0 = arith.constant 0 : index
    %c0_0 = arith.constant 0 : index
    %0 = vector.load %arg1[%c0, %c0_0] : memref<8x288xf32, #tpu.memory_space<vmem>>, vector<8x288xf32>
    %1 = vector.extract_strided_slice %0 {offsets = [0, 0], sizes = [8, 32], strides = [1, 1]} : vector<8x288xf32> to vector<8x32xf32>
    %2 = arith.negf %1 : vector<8x32xf32>
    %3 = math.exp %2 : vector<8x32xf32>
    %cst = arith.constant 1.000000e+00 : f32
    %4 = vector.broadcast %cst : f32 to vector<8x32xf32>
    %5 = arith.addf %4, %3 : vector<8x32xf32>
    %6 = arith.divf %4, %5 : vector<8x32xf32>
    %7 = tpu.concatenate %6, %6, %6, %6, %6, %6, %6, %6, %6 in 1 : vector<8x32xf32>, vector<8x32xf32>, vector<8x32xf32>, vector<8x32xf32>, vector<8x32xf32>, vector<8x32xf32>, vector<8x32xf32>, vector<8x32xf32>, vector<8x32xf32> -> vector<8x288xf32>
    %8 = arith.mulf %0, %7 : vector<8x288xf32>
    %c0_1 = arith.constant 0 : index
    %c0_2 = arith.constant 0 : index
    %9 = vector.load %arg2[%c0_1, %c0_2] : memref<8x288xf32, #tpu.memory_space<vmem>>, vector<8x288xf32>
    tpu.vector_store %arg2[%c0_1, %c0_2], %8 {strides = array<i32>} : memref<8x288xf32, #tpu.memory_space<vmem>>, vector<8x288xf32>,
    return
  }
  func.func @transform_0(%arg0: i32) -> (i32, i32) {
    %c0_i32 = arith.constant 0 : i32
    %c0_i32_0 = arith.constant 0 : i32
    return %arg0, %c0_i32 : i32, i32
  }
  func.func @transform_1(%arg0: i32) -> (i32, i32) {
    %c0_i32 = arith.constant 0 : i32
    %c0_i32_0 = arith.constant 0 : i32
    return %arg0, %c0_i32 : i32, i32
  }
}

</mosaic_0001>

<bundles_post_ra>
// kernel: tpu_custom_call.1
= control target key start
LH: loop header
LB: loop body
LE: loop exit
PB: predicated region body
PF: predicated region fallthrough
CT: control target
= control target key end

     0   :  { %6 = vsyncpa [#allocation3], 0  ;;  %s142_s0 = inlined_call_operand.hbm [shape: f32[8,288], index: 0, kind: input, shape index: {}, may-alias: {0,1}]   ;;  %s143_s1 = inlined_call_operand.hbm [shape: f32[8,288], index: 1, kind: output, shape index: {}, may-alias: {0,1}]  }
   0x1   :  { %7 = vsyncpa [#allocation4], 0  ;;  %s121_s6 = smov [#allocation2]  }
   0x2   :  { %s14_s7 = sshll.u32 %s121_s6, 4  ;;  %s15_s7 = int_to_ptr.vmem [resolvable:$true] %s14_s7 }
   0x3   :  { %s85_s8 = scalar_lea.vmem %s15_s7, 384  ;;  %p90_p1 = scmp.lt.s32.totalorder %s15_s7, %s15_s7 }
   0x4   :  { %p86_p0 = scmp.ne.s32.totalorder %s15_s7, %s85_s8  ;;  %p91_p2 = scmp.lt.s32.totalorder %s85_s8, %s85_s8 }
   0x6   :  { %p92_p3 = por %p91_p2, %p90_p1 }
   0x8   :  { %p93_p4 = pnand %p92_p3, %p86_p0 }
   0xa   :  { %96 = shalt.err (!%p93_p4)
}
   0xb   :  { %17 = dma.hbm_to_vmem [thread:$0]  %s142_s0, 384, %s15_s7, [#allocation3]  }
   0xc   :  { %117 = dma.done.wait [#allocation3], 384  }
   0xd   :  { %118 = vsyncadd [#allocation3], 4294966912  ;;  %v21_v0 = vld [vmem:[#allocation2] sm:$0xff]  ;;  %v23_v4 = vld [vmem:[#allocation2 + $0x10] sm:$0xff]  ;;  %s122_s11 = smov 32   ;;  %s123_s12 = smov 96  }
   0xe   :  { %v67_v1 = vmul.f32 -1.442695, %v21_v0  ;;  %vm40_vm0 = vcmask 261120   ;;  %s124_s13 = smov 64   ;;  %vm42_vm1 = vcmask 523264   ;;  %vm44_vm2 = vcmask 785408  }
   0xf   :  { %v22_v11 = vld [vmem:[#allocation2 + $0x8] sm:$0xff]  ;;  %s125_s0 = smov [#allocation5]  }
  0x10   :  { %73 = vpow2.f32 %v67_v1  ;;  %s58_s14 = sshll.u32 %s125_s0, 4  ;;  %s59_s14 = int_to_ptr.vmem [resolvable:$true] %s58_s14 }
  0x11   :  { %s97_s15 = scalar_lea.vmem %s59_s14, 384  ;;  %p102_p6 = scmp.lt.s32.totalorder %s59_s14, %s59_s14 }
  0x12   :  { %p98_p5 = scmp.ne.s32.totalorder %s59_s14, %s97_s15  ;;  %p103_p7 = scmp.lt.s32.totalorder %s97_s15, %s97_s15 }
  0x14   :  { %p104_p8 = por %p103_p7, %p102_p6 }
  0x16   :  { %p105_p9 = pnand %p104_p8, %p98_p5 }
  0x1d   :  { %v74_v2 = vpop.eup %73 }
  0x1e   :  { %v27_v3 = vadd.f32 1.0, %v74_v2 }
  0x20   :  { %75 = vrcp.f32 %v27_v3 }
  0x2d   :  { %v76_v5 = vpop.eup %75 }
  0x2e   :  { %31 = vrot.lane.b32.xlu0 %v76_v5, %s122_s11  ;;  %37 = vrot.lane.b32.xlu1 %v76_v5, %s123_s12  ;;  %v48_v6 = vmul.f32 %v76_v5, %v23_v4 }
  0x30   :  { %51 = vst.msk [vmem:[#allocation5 + $0x10] sm:$0xff] %vm40_vm0, %v48_v6 }
  0x32   :  { %34 = vrot.lane.b32.xlu0 %v76_v5, %s124_s13 }
  0xa0   :  { %v32_v7 = vpop.permute.xlu0 %31  ;;  %v38_v8 = vpop.permute.xlu1 %37 }
  0xa1   :  { %v41_v9 = vsel %vm40_vm0, %v76_v5, %v32_v7 }
  0xa4   :  { %v35_v10 = vpop.permute.xlu0 %34 }
  0xa5   :  { %v43_v12 = vsel %vm42_vm1, %v41_v9, %v35_v10 }
  0xa6   :  { %v45_v13 = vsel %vm44_vm2, %v43_v12, %v38_v8 }
  0xa7   :  { %v46_v14 = vmul.f32 %v45_v13, %v21_v0  ;;  %v47_v15 = vmul.f32 %v45_v13, %v22_v11 }
  0xa9   :  { %49 = vst [vmem:[#allocation5] sm:$0xff] %v46_v14  ;;  %50 = vst [vmem:[#allocation5 + $0x8] sm:$0xff] %v47_v15 }
  0xaa   :  { %108 = shalt.err (!%p105_p9)
}
  0xab   :  { %61 = dma.vmem_to_hbm [thread:$0]  %s59_s14, 384, %s143_s1, [#allocation4]  }
  0xac   :  { %119 = dma.done.wait [#allocation4], 384  }
  0xad   :  { %120 = vsyncadd [#allocation4], 4294966912 }
  0xae   :  { %65 = vsyncpa [#allocation3], 1 }
  0xaf   :  { %66 = vsyncpa [#allocation4], 1 }

</bundles_post_ra>
